<compile_context>
chip_gen: v5e
topology: v5e:2x2
jax: 0.10.0
libtpu: 0.0.40
codegen_flags: <defaults>
</compile_context>

<pallas_src>
import functools

import jax
import jax.numpy as jnp
from jax.experimental import pallas as pl
from jax.experimental.pallas import tpu as pltpu

_LANES = 128
_MAX_TSUB = 512  # 512 sublanes * 128 lanes = 65536 pixels per grid step


def _conv1x1_vpu_kernel(w_img_ref, w_elev_ref, b_ref, x_ref, h_ref, o_ref,
                        *, cimg, celev, cout):
    """1x1 conv over cat([x, h], dim=channel) as an unrolled VPU weighted sum.

    x_ref:   (cimg,  TSUB, 128) VMEM    h_ref: (celev, TSUB, 128) VMEM
    o_ref:   (cout,  TSUB, 128) VMEM
    w_img_ref:  (cout*cimg,)  f32 SMEM, row-major [co, ci]
    w_elev_ref: (cout*celev,) f32 SMEM, row-major [co, ci]
    b_ref:      (cout,)       f32 SMEM
    """
    for co in range(cout):
        acc = x_ref[0].astype(jnp.float32) * w_img_ref[co * cimg + 0]
        for ci in range(1, cimg):
            acc = acc + x_ref[ci].astype(jnp.float32) * w_img_ref[co * cimg + ci]
        for ci in range(celev):
            acc = acc + h_ref[ci].astype(jnp.float32) * w_elev_ref[co * celev + ci]
        o_ref[co] = (acc + b_ref[co]).astype(o_ref.dtype)


def make_outconv_params(img_in_ch, elev_in_ch, out_ch, key):
    """Deterministic synthetic weights for the 1x1 conv on cat([x, h], dim=1)."""
    cin = img_in_ch + elev_in_ch
    kw, kb = jax.random.split(key)
    bound = 1.0 / jnp.sqrt(jnp.float32(cin))
    w = jax.random.uniform(kw, (cin, out_ch), jnp.float32, -bound, bound)
    b = jax.random.uniform(kb, (out_ch,), jnp.float32, -bound, bound)
    w_img = w[:img_in_ch]        # (Cimg, Cout)
    w_elev = w[img_in_ch:]       # (Celev, Cout)
    return w_img, w_elev, b


def outconv_forward(x, h, w_img, w_elev, b):
    """x: (N, Cimg, H, W), h: (N, Celev, H, W) -> (N, Cout, H, W)."""
    N, Cimg, H, W = x.shape
    Celev = h.shape[1]
    Cout = w_img.shape[1]
    HW = H * W
    HW_pad = ((HW + _LANES - 1) // _LANES) * _LANES

    # Free views of the contiguous NCHW buffers: (N, C, H, W) -> (N, C, H*W).
    x3 = x.reshape(N, Cimg, HW)
    h3 = h.reshape(N, Celev, HW)
    if HW_pad != HW:
        # TODO(synk): padded fallback costs one extra HBM copy for odd image sizes.
        pad = HW_pad - HW
        x3 = jnp.pad(x3, ((0, 0), (0, 0), (0, pad)))
        h3 = jnp.pad(h3, ((0, 0), (0, 0), (0, pad)))
    R = HW_pad // _LANES  # sublane rows per image
    x4 = x3.reshape(N, Cimg, R, _LANES)   # dense per-channel (sublane, lane) slabs
    h4 = h3.reshape(N, Celev, R, _LANES)

    # Flat 1-D weights/bias for SMEM (avoids SMEM's 2-D [8,128] word padding).
    w_img_flat = jnp.transpose(w_img).reshape(-1).astype(jnp.float32)    # [co, ci]
    w_elev_flat = jnp.transpose(w_elev).reshape(-1).astype(jnp.float32)  # [co, ci]
    b_flat = b.reshape(-1).astype(jnp.float32)

    # Pixel-tile selection (sublane rows per grid step):
    #   * R <= 8: must take the full axis (8-divisibility rule).
    #   * else: split into >= 2 tiles (v7x megacore), round to a multiple of 8,
    #     cap at _MAX_TSUB (65536 pixels) to amortize per-step overhead while
    #     keeping the double-buffered dense footprint at a few MiB.
    if R <= 8:
        tsub = R
    else:
        half = -(-R // 2)                       # ceil(R / 2)
        tsub = min(_MAX_TSUB, ((half + 7) // 8) * 8)
    grid = (N, pl.cdiv(R, tsub))

    cost = pl.CostEstimate(
        flops=2 * N * HW_pad * (Cimg + Celev) * Cout,
        transcendentals=0,
        bytes_accessed=4 * N * HW_pad * (Cimg + Celev + Cout)
        + 4 * (Cimg + Celev + 1) * Cout,
    )

    kernel = functools.partial(_conv1x1_vpu_kernel, cimg=Cimg, celev=Celev, cout=Cout)

    out4 = pl.pallas_call(
        kernel,
        out_shape=jax.ShapeDtypeStruct((N, Cout, R, _LANES), x.dtype),
        grid_spec=pltpu.PrefetchScalarGridSpec(
            num_scalar_prefetch=0,
            grid=grid,
            in_specs=[
                pl.BlockSpec(memory_space=pltpu.MemorySpace.SMEM),   # w_img_flat
                pl.BlockSpec(memory_space=pltpu.MemorySpace.SMEM),   # w_elev_flat
                pl.BlockSpec(memory_space=pltpu.MemorySpace.SMEM),   # b_flat
                pl.BlockSpec((None, Cimg, tsub, _LANES), lambda n, p: (n, 0, p, 0)),
                pl.BlockSpec((None, Celev, tsub, _LANES), lambda n, p: (n, 0, p, 0)),
            ],
            out_specs=pl.BlockSpec((None, Cout, tsub, _LANES),
                                   lambda n, p: (n, 0, p, 0)),
        ),
        compiler_params=pltpu.CompilerParams(
            dimension_semantics=("parallel", "parallel")),
        cost_estimate=cost,
    )(w_img_flat, w_elev_flat, b_flat, x4, h4)

    out3 = out4.reshape(N, Cout, HW_pad)
    if HW_pad != HW:
        out3 = out3[:, :, :HW]
    return out3.reshape(N, Cout, H, W)


if __name__ == "__main__":
    img_in_ch, elev_in_ch, out_ch = 4, 2, 3
    N, H, W = 2, 16, 16

    key = jax.random.PRNGKey(0)
    kx, kh, kp = jax.random.split(key, 3)
    x = jax.random.normal(kx, (N, img_in_ch, H, W), jnp.float32)
    h = jax.random.normal(kh, (N, elev_in_ch, H, W), jnp.float32)
    w_img, w_elev, b = make_outconv_params(img_in_ch, elev_in_ch, out_ch, kp)

    out = outconv_forward(x, h, w_img, w_elev, b)
    out = jax.block_until_ready(out)

    # Pure-JAX reference (1x1 conv on cat([x, h]) == channel matmul).
    w_full = jnp.concatenate([w_img, w_elev], axis=0)            # (Cin, Cout)
    xh = jnp.concatenate([x, h], axis=1)                         # (N, Cin, H, W)
    ref = jnp.einsum("nchw,co->nohw", xh, w_full) + b[None, :, None, None]

    assert out.shape == (N, out_ch, H, W)
    assert jnp.allclose(out, ref, atol=1e-5, rtol=1e-5)

    print("KERNEL_OK")
</pallas_src>

<mosaic_0001>
module attributes {stable_mosaic.version = 11 : i64} {
  func.func @_conv1x1_vpu_kernel(%arg0: i32, %arg1: i32, %arg2: memref<12xf32, #tpu.memory_space<smem>>, %arg3: memref<6xf32, #tpu.memory_space<smem>>, %arg4: memref<3xf32, #tpu.memory_space<smem>>, %arg5: memref<1x4x2x128xf32, #tpu.memory_space<vmem>>, %arg6: memref<1x2x2x128xf32, #tpu.memory_space<vmem>>, %arg7: memref<1x3x2x128xf32, #tpu.memory_space<vmem>>) attributes {dimension_semantics = [#tpu.dimension_semantics<parallel>, #tpu.dimension_semantics<parallel>], iteration_bounds = array<i64: 2, 1>, scalar_prefetch = 0 : i64, scratch_operands = 0 : i64, tpu.core_type = #tpu.core_type<tc>, window_params = [{transform_indices = @transform_0, window_bounds = array<i64: 12>}, {transform_indices = @transform_1, window_bounds = array<i64: 6>}, {transform_indices = @transform_2, window_bounds = array<i64: 3>}, {transform_indices = @transform_3, window_bounds = array<i64: 1, 4, 2, 128>}, {transform_indices = @transform_4, window_bounds = array<i64: 1, 2, 2, 128>}, {transform_indices = @transform_5, window_bounds = array<i64: 1, 3, 2, 128>}]} {
    %c0 = arith.constant 0 : index
    %c0_0 = arith.constant 0 : index
    %c0_1 = arith.constant 0 : index
    %c0_2 = arith.constant 0 : index
    %0 = vector.load %arg5[%c0, %c0_0, %c0_1, %c0_2] : memref<1x4x2x128xf32, #tpu.memory_space<vmem>>, vector<1x1x2x128xf32>
    %1 = vector.shape_cast %0 : vector<1x1x2x128xf32> to vector<2x128xf32>
    %c0_3 = arith.constant 0 : index
    %2 = memref.load %arg2[%c0_3] : memref<12xf32, #tpu.memory_space<smem>>
    %3 = vector.broadcast %2 : f32 to vector<2x128xf32>
    %4 = arith.mulf %1, %3 : vector<2x128xf32>
    %c0_4 = arith.constant 0 : index
    %c1 = arith.constant 1 : index
    %c0_5 = arith.constant 0 : index
    %c0_6 = arith.constant 0 : index
    %5 = vector.load %arg5[%c0_4, %c1, %c0_5, %c0_6] : memref<1x4x2x128xf32, #tpu.memory_space<vmem>>, vector<1x1x2x128xf32>
    %6 = vector.shape_cast %5 : vector<1x1x2x128xf32> to vector<2x128xf32>
    %c1_7 = arith.constant 1 : index
    %7 = memref.load %arg2[%c1_7] : memref<12xf32, #tpu.memory_space<smem>>
    %8 = vector.broadcast %7 : f32 to vector<2x128xf32>
    %9 = arith.mulf %6, %8 : vector<2x128xf32>
    %10 = arith.addf %4, %9 : vector<2x128xf32>
    %c0_8 = arith.constant 0 : index
    %c2 = arith.constant 2 : index
    %c0_9 = arith.constant 0 : index
    %c0_10 = arith.constant 0 : index
    %11 = vector.load %arg5[%c0_8, %c2, %c0_9, %c0_10] : memref<1x4x2x128xf32, #tpu.memory_space<vmem>>, vector<1x1x2x128xf32>
    %12 = vector.shape_cast %11 : vector<1x1x2x128xf32> to vector<2x128xf32>
    %c2_11 = arith.constant 2 : index
    %13 = memref.load %arg2[%c2_11] : memref<12xf32, #tpu.memory_space<smem>>
    %14 = vector.broadcast %13 : f32 to vector<2x128xf32>
    %15 = arith.mulf %12, %14 : vector<2x128xf32>
    %16 = arith.addf %10, %15 : vector<2x128xf32>
    %c0_12 = arith.constant 0 : index
    %c3 = arith.constant 3 : index
    %c0_13 = arith.constant 0 : index
    %c0_14 = arith.constant 0 : index
    %17 = vector.load %arg5[%c0_12, %c3, %c0_13, %c0_14] : memref<1x4x2x128xf32, #tpu.memory_space<vmem>>, vector<1x1x2x128xf32>
    %18 = vector.shape_cast %17 : vector<1x1x2x128xf32> to vector<2x128xf32>
    %c3_15 = arith.constant 3 : index
    %19 = memref.load %arg2[%c3_15] : memref<12xf32, #tpu.memory_space<smem>>
    %20 = vector.broadcast %19 : f32 to vector<2x128xf32>
    %21 = arith.mulf %18, %20 : vector<2x128xf32>
    %22 = arith.addf %16, %21 : vector<2x128xf32>
    %c0_16 = arith.constant 0 : index
    %c0_17 = arith.constant 0 : index
    %c0_18 = arith.constant 0 : index
    %c0_19 = arith.constant 0 : index
    %23 = vector.load %arg6[%c0_16, %c0_17, %c0_18, %c0_19] : memref<1x2x2x128xf32, #tpu.memory_space<vmem>>, vector<1x1x2x128xf32>
    %24 = vector.shape_cast %23 : vector<1x1x2x128xf32> to vector<2x128xf32>
    %c0_20 = arith.constant 0 : index
    %25 = memref.load %arg3[%c0_20] : memref<6xf32, #tpu.memory_space<smem>>
    %26 = vector.broadcast %25 : f32 to vector<2x128xf32>
    %27 = arith.mulf %24, %26 : vector<2x128xf32>
    %28 = arith.addf %22, %27 : vector<2x128xf32>
    %c0_21 = arith.constant 0 : index
    %c1_22 = arith.constant 1 : index
    %c0_23 = arith.constant 0 : index
    %c0_24 = arith.constant 0 : index
    %29 = vector.load %arg6[%c0_21, %c1_22, %c0_23, %c0_24] : memref<1x2x2x128xf32, #tpu.memory_space<vmem>>, vector<1x1x2x128xf32>
    %30 = vector.shape_cast %29 : vector<1x1x2x128xf32> to vector<2x128xf32>
    %c1_25 = arith.constant 1 : index
    %31 = memref.load %arg3[%c1_25] : memref<6xf32, #tpu.memory_space<smem>>
    %32 = vector.broadcast %31 : f32 to vector<2x128xf32>
    %33 = arith.mulf %30, %32 : vector<2x128xf32>
    %34 = arith.addf %28, %33 : vector<2x128xf32>
    %c0_26 = arith.constant 0 : index
    %35 = memref.load %arg4[%c0_26] : memref<3xf32, #tpu.memory_space<smem>>
    %36 = vector.broadcast %35 : f32 to vector<2x128xf32>
    %37 = arith.addf %34, %36 : vector<2x128xf32>
    %c0_27 = arith.constant 0 : index
    %c0_28 = arith.constant 0 : index
    %c0_29 = arith.constant 0 : index
    %c0_30 = arith.constant 0 : index
    %38 = vector.load %arg7[%c0_27, %c0_28, %c0_29, %c0_30] : memref<1x3x2x128xf32, #tpu.memory_space<vmem>>, vector<1x1x2x128xf32>
    %39 = vector.shape_cast %38 : vector<1x1x2x128xf32> to vector<2x128xf32>
    %40 = vector.shape_cast %37 : vector<2x128xf32> to vector<1x1x2x128xf32>
    tpu.vector_store %arg7[%c0_27, %c0_28, %c0_29, %c0_30], %40 {strides = array<i32>} : memref<1x3x2x128xf32, #tpu.memory_space<vmem>>, vector<1x1x2x128xf32>,
    %c0_31 = arith.constant 0 : index
    %c0_32 = arith.constant 0 : index
    %c0_33 = arith.constant 0 : index
    %c0_34 = arith.constant 0 : index
    %41 = vector.load %arg5[%c0_31, %c0_32, %c0_33, %c0_34] : memref<1x4x2x128xf32, #tpu.memory_space<vmem>>, vector<1x1x2x128xf32>
    %42 = vector.shape_cast %41 : vector<1x1x2x128xf32> to vector<2x128xf32>
    %c4 = arith.constant 4 : index
    %43 = memref.load %arg2[%c4] : memref<12xf32, #tpu.memory_space<smem>>
    %44 = vector.broadcast %43 : f32 to vector<2x128xf32>
    %45 = arith.mulf %42, %44 : vector<2x128xf32>
    %c0_35 = arith.constant 0 : index
    %c1_36 = arith.constant 1 : index
    %c0_37 = arith.constant 0 : index
    %c0_38 = arith.constant 0 : index
    %46 = vector.load %arg5[%c0_35, %c1_36, %c0_37, %c0_38] : memref<1x4x2x128xf32, #tpu.memory_space<vmem>>, vector<1x1x2x128xf32>
    %47 = vector.shape_cast %46 : vector<1x1x2x128xf32> to vector<2x128xf32>
    %c5 = arith.constant 5 : index
    %48 = memref.load %arg2[%c5] : memref<12xf32, #tpu.memory_space<smem>>
    %49 = vector.broadcast %48 : f32 to vector<2x128xf32>
    %50 = arith.mulf %47, %49 : vector<2x128xf32>
    %51 = arith.addf %45, %50 : vector<2x128xf32>
    %c0_39 = arith.constant 0 : index
    %c2_40 = arith.constant 2 : index
    %c0_41 = arith.constant 0 : index
    %c0_42 = arith.constant 0 : index
    %52 = vector.load %arg5[%c0_39, %c2_40, %c0_41, %c0_42] : memref<1x4x2x128xf32, #tpu.memory_space<vmem>>, vector<1x1x2x128xf32>
    %53 = vector.shape_cast %52 : vector<1x1x2x128xf32> to vector<2x128xf32>
    %c6 = arith.constant 6 : index
    %54 = memref.load %arg2[%c6] : memref<12xf32, #tpu.memory_space<smem>>
    %55 = vector.broadcast %54 : f32 to vector<2x128xf32>
    %56 = arith.mulf %53, %55 : vector<2x128xf32>
    %57 = arith.addf %51, %56 : vector<2x128xf32>
    %c0_43 = arith.constant 0 : index
    %c3_44 = arith.constant 3 : index
    %c0_45 = arith.constant 0 : index
    %c0_46 = arith.constant 0 : index
    %58 = vector.load %arg5[%c0_43, %c3_44, %c0_45, %c0_46] : memref<1x4x2x128xf32, #tpu.memory_space<vmem>>, vector<1x1x2x128xf32>
    %59 = vector.shape_cast %58 : vector<1x1x2x128xf32> to vector<2x128xf32>
    %c7 = arith.constant 7 : index
    %60 = memref.load %arg2[%c7] : memref<12xf32, #tpu.memory_space<smem>>
    %61 = vector.broadcast %60 : f32 to vector<2x128xf32>
    %62 = arith.mulf %59, %61 : vector<2x128xf32>
    %63 = arith.addf %57, %62 : vector<2x128xf32>
    %c0_47 = arith.constant 0 : index
    %c0_48 = arith.constant 0 : index
    %c0_49 = arith.constant 0 : index
    %c0_50 = arith.constant 0 : index
    %64 = vector.load %arg6[%c0_47, %c0_48, %c0_49, %c0_50] : memref<1x2x2x128xf32, #tpu.memory_space<vmem>>, vector<1x1x2x128xf32>
    %65 = vector.shape_cast %64 : vector<1x1x2x128xf32> to vector<2x128xf32>
    %c2_51 = arith.constant 2 : index
    %66 = memref.load %arg3[%c2_51] : memref<6xf32, #tpu.memory_space<smem>>
    %67 = vector.broadcast %66 : f32 to vector<2x128xf32>
    %68 = arith.mulf %65, %67 : vector<2x128xf32>
    %69 = arith.addf %63, %68 : vector<2x128xf32>
    %c0_52 = arith.constant 0 : index
    %c1_53 = arith.constant 1 : index
    %c0_54 = arith.constant 0 : index
    %c0_55 = arith.constant 0 : index
    %70 = vector.load %arg6[%c0_52, %c1_53, %c0_54, %c0_55] : memref<1x2x2x128xf32, #tpu.memory_space<vmem>>, vector<1x1x2x128xf32>
    %71 = vector.shape_cast %70 : vector<1x1x2x128xf32> to vector<2x128xf32>
    %c3_56 = arith.constant 3 : index
    %72 = memref.load %arg3[%c3_56] : memref<6xf32, #tpu.memory_space<smem>>
    %73 = vector.broadcast %72 : f32 to vector<2x128xf32>
    %74 = arith.mulf %71, %73 : vector<2x128xf32>
    %75 = arith.addf %69, %74 : vector<2x128xf32>
    %c1_57 = arith.constant 1 : index
    %76 = memref.load %arg4[%c1_57] : memref<3xf32, #tpu.memory_space<smem>>
    %77 = vector.broadcast %76 : f32 to vector<2x128xf32>
    %78 = arith.addf %75, %77 : vector<2x128xf32>
    %c0_58 = arith.constant 0 : index
    %c1_59 = arith.constant 1 : index
    %c0_60 = arith.constant 0 : index
    %c0_61 = arith.constant 0 : index
    %79 = vector.load %arg7[%c0_58, %c1_59, %c0_60, %c0_61] : memref<1x3x2x128xf32, #tpu.memory_space<vmem>>, vector<1x1x2x128xf32>
    %80 = vector.shape_cast %79 : vector<1x1x2x128xf32> to vector<2x128xf32>
    %81 = vector.shape_cast %78 : vector<2x128xf32> to vector<1x1x2x128xf32>
    tpu.vector_store %arg7[%c0_58, %c1_59, %c0_60, %c0_61], %81 {strides = array<i32>} : memref<1x3x2x128xf32, #tpu.memory_space<vmem>>, vector<1x1x2x128xf32>,
    %c0_62 = arith.constant 0 : index
    %c0_63 = arith.constant 0 : index
    %c0_64 = arith.constant 0 : index
    %c0_65 = arith.constant 0 : index
    %82 = vector.load %arg5[%c0_62, %c0_63, %c0_64, %c0_65] : memref<1x4x2x128xf32, #tpu.memory_space<vmem>>, vector<1x1x2x128xf32>
    %83 = vector.shape_cast %82 : vector<1x1x2x128xf32> to vector<2x128xf32>
    %c8 = arith.constant 8 : index
    %84 = memref.load %arg2[%c8] : memref<12xf32, #tpu.memory_space<smem>>
    %85 = vector.broadcast %84 : f32 to vector<2x128xf32>
    %86 = arith.mulf %83, %85 : vector<2x128xf32>
    %c0_66 = arith.constant 0 : index
    %c1_67 = arith.constant 1 : index
    %c0_68 = arith.constant 0 : index
    %c0_69 = arith.constant 0 : index
    %87 = vector.load %arg5[%c0_66, %c1_67, %c0_68, %c0_69] : memref<1x4x2x128xf32, #tpu.memory_space<vmem>>, vector<1x1x2x128xf32>
    %88 = vector.shape_cast %87 : vector<1x1x2x128xf32> to vector<2x128xf32>
    %c9 = arith.constant 9 : index
    %89 = memref.load %arg2[%c9] : memref<12xf32, #tpu.memory_space<smem>>
    %90 = vector.broadcast %89 : f32 to vector<2x128xf32>
    %91 = arith.mulf %88, %90 : vector<2x128xf32>
    %92 = arith.addf %86, %91 : vector<2x128xf32>
    %c0_70 = arith.constant 0 : index
    %c2_71 = arith.constant 2 : index
    %c0_72 = arith.constant 0 : index
    %c0_73 = arith.constant 0 : index
    %93 = vector.load %arg5[%c0_70, %c2_71, %c0_72, %c0_73] : memref<1x4x2x128xf32, #tpu.memory_space<vmem>>, vector<1x1x2x128xf32>
    %94 = vector.shape_cast %93 : vector<1x1x2x128xf32> to vector<2x128xf32>
    %c10 = arith.constant 10 : index
    %95 = memref.load %arg2[%c10] : memref<12xf32, #tpu.memory_space<smem>>
    %96 = vector.broadcast %95 : f32 to vector<2x128xf32>
    %97 = arith.mulf %94, %96 : vector<2x128xf32>
    %98 = arith.addf %92, %97 : vector<2x128xf32>
    %c0_74 = arith.constant 0 : index
    %c3_75 = arith.constant 3 : index
    %c0_76 = arith.constant 0 : index
    %c0_77 = arith.constant 0 : index
    %99 = vector.load %arg5[%c0_74, %c3_75, %c0_76, %c0_77] : memref<1x4x2x128xf32, #tpu.memory_space<vmem>>, vector<1x1x2x128xf32>
    %100 = vector.shape_cast %99 : vector<1x1x2x128xf32> to vector<2x128xf32>
    %c11 = arith.constant 11 : index
    %101 = memref.load %arg2[%c11] : memref<12xf32, #tpu.memory_space<smem>>
    %102 = vector.broadcast %101 : f32 to vector<2x128xf32>
    %103 = arith.mulf %100, %102 : vector<2x128xf32>
    %104 = arith.addf %98, %103 : vector<2x128xf32>
    %c0_78 = arith.constant 0 : index
    %c0_79 = arith.constant 0 : index
    %c0_80 = arith.constant 0 : index
    %c0_81 = arith.constant 0 : index
    %105 = vector.load %arg6[%c0_78, %c0_79, %c0_80, %c0_81] : memref<1x2x2x128xf32, #tpu.memory_space<vmem>>, vector<1x1x2x128xf32>
    %106 = vector.shape_cast %105 : vector<1x1x2x128xf32> to vector<2x128xf32>
    %c4_82 = arith.constant 4 : index
    %107 = memref.load %arg3[%c4_82] : memref<6xf32, #tpu.memory_space<smem>>
    %108 = vector.broadcast %107 : f32 to vector<2x128xf32>
    %109 = arith.mulf %106, %108 : vector<2x128xf32>
    %110 = arith.addf %104, %109 : vector<2x128xf32>
    %c0_83 = arith.constant 0 : index
    %c1_84 = arith.constant 1 : index
    %c0_85 = arith.constant 0 : index
    %c0_86 = arith.constant 0 : index
    %111 = vector.load %arg6[%c0_83, %c1_84, %c0_85, %c0_86] : memref<1x2x2x128xf32, #tpu.memory_space<vmem>>, vector<1x1x2x128xf32>
    %112 = vector.shape_cast %111 : vector<1x1x2x128xf32> to vector<2x128xf32>
    %c5_87 = arith.constant 5 : index
    %113 = memref.load %arg3[%c5_87] : memref<6xf32, #tpu.memory_space<smem>>
    %114 = vector.broadcast %113 : f32 to vector<2x128xf32>
    %115 = arith.mulf %112, %114 : vector<2x128xf32>
    %116 = arith.addf %110, %115 : vector<2x128xf32>
    %c2_88 = arith.constant 2 : index
    %117 = memref.load %arg4[%c2_88] : memref<3xf32, #tpu.memory_space<smem>>
    %118 = vector.broadcast %117 : f32 to vector<2x128xf32>
    %119 = arith.addf %116, %118 : vector<2x128xf32>
    %c0_89 = arith.constant 0 : index
    %c2_90 = arith.constant 2 : index
    %c0_91 = arith.constant 0 : index
    %c0_92 = arith.constant 0 : index
    %120 = vector.load %arg7[%c0_89, %c2_90, %c0_91, %c0_92] : memref<1x3x2x128xf32, #tpu.memory_space<vmem>>, vector<1x1x2x128xf32>
    %121 = vector.shape_cast %120 : vector<1x1x2x128xf32> to vector<2x128xf32>
    %122 = vector.shape_cast %119 : vector<2x128xf32> to vector<1x1x2x128xf32>
    tpu.vector_store %arg7[%c0_89, %c2_90, %c0_91, %c0_92], %122 {strides = array<i32>} : memref<1x3x2x128xf32, #tpu.memory_space<vmem>>, vector<1x1x2x128xf32>,
    return
  }
  func.func @transform_0(%arg0: i32, %arg1: i32) -> i32 {
    %c0_i32 = arith.constant 0 : i32
    %c0_i32_0 = arith.constant 0 : i32
    return %c0_i32 : i32
  }
  func.func @transform_1(%arg0: i32, %arg1: i32) -> i32 {
    %c0_i32 = arith.constant 0 : i32
    %c0_i32_0 = arith.constant 0 : i32
    return %c0_i32 : i32
  }
  func.func @transform_2(%arg0: i32, %arg1: i32) -> i32 {
    %c0_i32 = arith.constant 0 : i32
    %c0_i32_0 = arith.constant 0 : i32
    return %c0_i32 : i32
  }
  func.func @transform_3(%arg0: i32, %arg1: i32) -> (i32, i32, i32, i32) {
    %c0_i32 = arith.constant 0 : i32
    %c0_i32_0 = arith.constant 0 : i32
    %c0_i32_1 = arith.constant 0 : i32
    return %arg0, %c0_i32, %arg1, %c0_i32_0 : i32, i32, i32, i32
  }
  func.func @transform_4(%arg0: i32, %arg1: i32) -> (i32, i32, i32, i32) {
    %c0_i32 = arith.constant 0 : i32
    %c0_i32_0 = arith.constant 0 : i32
    %c0_i32_1 = arith.constant 0 : i32
    return %arg0, %c0_i32, %arg1, %c0_i32_0 : i32, i32, i32, i32
  }
  func.func @transform_5(%arg0: i32, %arg1: i32) -> (i32, i32, i32, i32) {
    %c0_i32 = arith.constant 0 : i32
    %c0_i32_0 = arith.constant 0 : i32
    %c0_i32_1 = arith.constant 0 : i32
    return %arg0, %c0_i32, %arg1, %c0_i32_0 : i32, i32, i32, i32
  }
}

</mosaic_0001>

<bundles_post_ra>
// kernel: tpu_custom_call.1
= control target key start
LH: loop header
LB: loop body
LE: loop exit
PB: predicated region body
PF: predicated region fallthrough
CT: control target
= control target key end

     0   :  { %s1252_s0 = inlined_call_operand.hbm [shape: f32[12], index: 0, kind: input, shape index: {}]   ;;  %s1253_s1 = inlined_call_operand.hbm [shape: f32[6], index: 1, kind: input, shape index: {}]   ;;  %s1254_s2 = inlined_call_operand.vmem [shape: f32[3], index: 2, kind: input, shape index: {}]   ;;  %s1255_s3 = inlined_call_operand.hbm [shape: f32[2,4,2,128], index: 3, kind: input, shape index: {}]   ;;  %s1256_s4 = inlined_call_operand.hbm [shape: f32[2,2,2,128], index: 4, kind: input, shape index: {}]   ;;  %s1257_s5 = inlined_call_operand.hbm [shape: f32[2,3,2,128], index: 5, kind: output, shape index: {}]  }
   0x1   :  { %1258 = sst [smem:[#allocation20_spill]] %s1252_s0 }
   0x2   :  { %1259 = sst [smem:[#allocation21_spill]] %s1253_s1 }
   0x3   :  { %1260 = sst [smem:[#allocation22_spill]] %s1254_s2 }
   0x4   :  { %1261 = sst [smem:[#allocation23_spill]] %s1255_s3 }
   0x5   :  { %10 = vsyncpa [#allocation5], 0 }
   0x6   :  { %11 = vsyncpa [#allocation8], 0 }
   0x7   :  { %12 = vsyncpa [#allocation6], 0 }
   0x8   :  { %13 = vsyncpa [#allocation3], 0 }
   0x9   :  { %15 = vsyncpa [#allocation3 + $0x1], 0 }
   0xa   :  { %16 = vsyncpa [#allocation12], 0 }
   0xb   :  { %18 = vsyncpa [#allocation12 + $0x1], 0 }
   0xc   :  { %19 = vsyncpa [#allocation4], 0 }
   0xd   :  { %21 = vsyncpa [#allocation4 + $0x1], 0  ;;  %s1015_s18 = smov 0   ;;  %s1017_s19 = smov 0  }
   0xe   :  { %s1019_s20 = smov 0   ;;  %s1021_s21 = smov 0  }
   0xf   :  { %s1023_s22 = smov 0   ;;  %s1025_s23 = smov 0  }
  0x10 LB: > { %s613_s24 = sadd.s32 4294967295, %s976_s23   ;;  %s614_s25 = sadd.s32 4294967294, %s976_s23   ;;  %s976_s23 = sphi %s1025_s23, %s27_s23   ;;  %s972_s22 = sphi %s1023_s22, %s1277_s22   ;;  %s968_s21 = sphi %s1021_s21, %s1276_s21   ;;  %s964_s20 = sphi %s1019_s20, %s1275_s20   ;;  %s960_s19 = sphi %s1017_s19, %s1274_s19   ;;  %s956_s18 = sphi %s1015_s18, %s1273_s18  }
  0x11   : > { %s111_s26 = sadd.s32 1, %s964_s20  ;;  %p118_p0 = scmp.ne.s32.totalorder %s964_s20, %s960_s19 }
  0x12   : > { %p119_p1 = scmp.eq.s32.totalorder %s976_s23, 0  ;;  %p124_p2 = scmp.ne.s32.totalorder %s960_s19, %s956_s18 }
  0x13   : > { %p1053_p3 = scmp.eq.s32.totalorder %s613_s24, 0  ;;  %p178_p4 = scmp.eq.s32.totalorder %s613_s24, 1 }
  0x14   : > { %p1057_p5 = por %p119_p1, %p118_p0  ;;  %p184_p6 = scmp.eq.s32.totalorder %s614_s25, 1 }
  0x15   : > { %p1063_p7 = por %p1053_p3, %p124_p2  ;;  %p1067_p8 = por %p178_p4, %p118_p0 }
  0x16   : > { %p1071_p9 = por %p184_p6, %p124_p2  ;;  %p615_p10 = scmp.ge.s32.totalorder %s976_s23, 1 }
  0x17   : > { %p191_p11 = scmp.lt.s32.totalorder %s976_s23, 3  ;;  %s1267_s0 = sld [smem:[#allocation20_spill]] }
  0x18   : > { %p619_p13 = scmp.ge.s32.totalorder %s976_s23, 2  ;;  %s1269_s1 = sld [smem:[#allocation21_spill]] }
  0x19   : > { %p1080_p12 = pnand %p615_p10, %p191_p11  ;;  %s1270_s2 = sld [smem:[#allocation22_spill]] }
  0x1a   : > { %s978_s17 = smov [#allocation2]   ;;  %s979_s24 = smov [#allocation7]  }
  0x1b   : > { %p689_p0 = pneg %p1080_p12  ;;  %s980_s25 = smov [#allocation9]  }
  0x1c   : > { %s39_s7 = sadd.s32 1, %s972_s22  ;;  %p713_p2 = scmp.lt.s32.totalorder %s976_s23, 2 }
  0x1d   : > { %s203_s9 = sshll.u32 %s1267_s0, 4  ;;  %p690_p1 = pnand %p689_p0, %p1053_p3  ;;  %s204_s9 = int_to_ptr.hbm [resolvable:$true] %s203_s9 }
  0x1e   : > { %s213_s13 = sshll.u32 %s1269_s1, 4  ;;  %p41_p4 = scmp.ge.s32.totalorder %s39_s7, 2  ;;  %s214_s13 = int_to_ptr.hbm [resolvable:$true] %s213_s13 }
  0x1f   : > { %s223_s16 = sshll.u32 %s1270_s2, 4  ;;  %s1098_s8 = sand.u32 1, %s964_s20   ;;  %s224_s16 = int_to_ptr.vmem [resolvable:$true] %s223_s16 }
  0x20   : > { %692 = dma.hbm_to_smem (!%p690_p1), %s204_s9, 16, %s978_s17, [#allocation5]  }
  0x21   : > { %695 = dma.hbm_to_smem (!%p690_p1), %s214_s13, 16, %s979_s24, [#allocation8]  }
  0x22   : > { %698 = dma.vmem_to_smem (!%p690_p1), %s224_s16, 16, %s980_s25, [#allocation6]  }
  0x23   : > { %s620_s11 = sshll.u32 %s1098_s8, 3  ;;  %s1279_s7 = smov (%p41_p4, %s39_s7), 0 }
  0x24   : > { %s667_s9 = sshll.u32 %s972_s22, 3  ;;  %s106_s12 = ssub.s32 %s972_s22, %s1279_s7 }
  0x25   : > { %s1271_s3 = sld [smem:[#allocation23_spill]]  ;;  %p109_p6 = scmp.eq.s32.totalorder %s106_s12, 0 }
  0x26   : > { %s238_s17 = scalar_lea.vmem [#allocation10], %s620_s11  ;;  %p1118_p10 = pnand %p713_p2, %p1057_p5 }
  0x27   : > { %s247_s24 = sshll.u32 %s238_s17, 4  ;;  %s235_s13 = scalar_lea.sflag [#allocation3], %s1098_s8  ;;  %s248_s24 = int_to_ptr.vmem [resolvable:$true] %s247_s24 }
  0x28   : > { %s1112_s25 = scalar_select %p109_p6, %s964_s20, %s111_s26  }
  0x29   : > { %s982_s12 = smov 2   ;;  %s623_s11 = sshll.u32 %s1098_s8, 2 }
  0x2a   : > { %s668_s14 = sshll.u32 %s972_s22, 2  ;;  %s261_s28 = scalar_lea.vmem [#allocation11], %s623_s11 }
  0x2b   : > { %s244_s15 = scalar_lea.hbm %s1271_s3, %s667_s9  ;;  %s981_s9 = smov 32  }
  0x2c   : > { %s245_s16 = sshll.u32 %s244_s15, 4  ;;  %s267_s26 = scalar_lea.hbm %s1256_s4, %s668_s14  ;;  %s246_s16 = int_to_ptr.hbm [resolvable:$true] %s245_s16 }
  0x2d   : > { %702 = dma.hbm_to_vmem [thread:$0]  (!%p1118_p10), %s246_s16, 128, %s248_s24, %s235_s13, %s981_s9, %s981_s9, %s982_s12  }
  0x2e   : > { %s268_s1 = sshll.u32 %s267_s26, 4  ;;  %s270_s2 = sshll.u32 %s261_s28, 4  ;;  %s269_s1 = int_to_ptr.hbm [resolvable:$true] %s268_s1  ;;  %s271_s2 = int_to_ptr.vmem [resolvable:$true] %s270_s2 }
  0x2f   : > { %s258_s3 = scalar_lea.sflag [#allocation12], %s1098_s8  ;;  %282 = sbr.rel (%p1080_p12) target bundleno = 106 (0x6a), region = 40 }
  0x30   : > { %705 = dma.hbm_to_vmem [thread:$0]  (!%p1118_p10), %s269_s1, 64, %s271_s2, %s258_s3, %s981_s9, %s981_s9, %s982_s12  }
  0x34   : > { %931 = dma.done.wait (%p1053_p3), [#allocation5], 16  }
  0x35   : > { %933 = vsyncadd (%p1053_p3), [#allocation5], 4294967280 }
  0x36   : > { %935 = dma.done.wait (%p1053_p3), [#allocation8], 16  }
  0x37   : > { %937 = vsyncadd (%p1053_p3), [#allocation8], 4294967280 }
  0x38   : > { %939 = dma.done.wait (%p1053_p3), [#allocation6], 16  }
  0x39   : > { %941 = vsyncadd (%p1053_p3), [#allocation6], 4294967280  ;;  %s1148_s0 = sand.u32 1, %s960_s19  }
  0x3a   : > { %s630_s1 = sshll.u32 %s1148_s0, 3  ;;  %s300_s2 = scalar_lea.sflag [#allocation3], %s1148_s0 }
  0x3b   : > { %s1152_s3 = scalar_lea.vmem [#allocation10], %s630_s1 }
  0x3c   : > { %943 = dma.done.wait (%p1063_p7), %s300_s2, 128  }
  0x3d   : > { %945 = vsyncadd (%p1063_p7), %s300_s2, 4294967168  ;;  %s631_s27 = sshll.u32 %s1148_s0, 2  ;;  %s310_s10 = scalar_lea.sflag [#allocation12], %s1148_s0 }
  0x3e   : > { %s1160_s8 = scalar_lea.vmem [#allocation11], %s631_s27 }
  0x3f   : > { %947 = dma.done.wait (%p1063_p7), %s310_s10, 64  }
  0x40   : > { %949 = vsyncadd (%p1063_p7), %s310_s10, 4294967232 }
  0x41   : > { %319 = sfence }
  0x42   : > { %s348_s16 = sld [smem:[#allocation2]]  ;;  %v347_v0 = vld [vmem:[%s1152_s3] sm:$0x3]  ;;  %v632_v1 = vld [vmem:[%s1152_s3 + $0x2] sm:$0x3]  ;;  %s669_s10 = smul.u32 6, %s1148_s0 }
  0x43   : > { %s633_s24 = sld [smem:[#allocation2 + $0x1]]  ;;  %v634_v3 = vld [vmem:[%s1152_s3 + $0x4] sm:$0x3]  ;;  %v636_v6 = vld [vmem:[%s1152_s3 + $0x6] sm:$0x3] }
  0x44   : > { %s635_s13 = sld [smem:[#allocation2 + $0x2]]  ;;  %v369_v11 = vld [vmem:[%s1160_s8] sm:$0x3]  ;;  %v638_v15 = vld [vmem:[%s1160_s8 + $0x2] sm:$0x3] }
  0x45   : > { %s637_s9 = sld [smem:[#allocation2 + $0x3]]  ;;  %v384_v17 = vld [vmem:[%s1152_s3] sm:$0x3]  ;;  %v641_v20 = vld [vmem:[%s1152_s3 + $0x2] sm:$0x3] }
  0x46   : > { %s370_s12 = sld [smem:[#allocation7]]  ;;  %v643_v22 = vld [vmem:[%s1152_s3 + $0x4] sm:$0x3]  ;;  %v645_v27 = vld [vmem:[%s1152_s3 + $0x6] sm:$0x3] }
  0x47   : > { %s1168_s11 = sld [smem:[#allocation7 + $0x1]]  ;;  %v403_v33 = vld [vmem:[%s1160_s8] sm:$0x3]  ;;  %v648_v39 = vld [vmem:[%s1160_s8 + $0x2] sm:$0x3] }
  0x48   : > { %v349_v2 = vstv %s348_s16  ;;  %s1171_s14 = sld [smem:[#allocation9]]  ;;  %v418_v41 = vld [vmem:[%s1152_s3] sm:$0x3]  ;;  %v653_v44 = vld [vmem:[%s1152_s3 + $0x2] sm:$0x3] }
  0x49   : > { %v350_v4 = vmul.f32 %v349_v2, %v347_v0  ;;  %v354_v5 = vstv %s633_s24  ;;  %s640_s29 = sld [smem:[#allocation2 + $0x4]]  ;;  %v655_v47 = vld [vmem:[%s1152_s3 + $0x4] sm:$0x3]  ;;  %v657_v52 = vld [vmem:[%s1152_s3 + $0x6] sm:$0x3]  ;;  %s670_s3 = smul.u32 6, %s968_s21 }
  0x4a   : > { %v355_v7 = vmul.f32 %v632_v1, %v354_v5  ;;  %v360_v8 = vstv %s635_s13  ;;  %s642_s15 = sld [smem:[#allocation2 + $0x5]]  ;;  %v437_v58 = vld [vmem:[%s1160_s8] sm:$0x3]  ;;  %v660_v0 = vld [vmem:[%s1160_s8 + $0x2] sm:$0x3]  ;;  %s453_s8 = scalar_lea.sflag [#allocation4], %s1148_s0 }
  0x4b   : > { %v361_v9 = vmul.f32 %v634_v3, %v360_v8  ;;  %v366_v10 = vstv %s637_s9  ;;  %s644_s17 = sld [smem:[#allocation2 + $0x6]] }
  0x4c   : > { %v356_v12 = vadd.f32 %v355_v7, %v350_v4  ;;  %v367_v13 = vmul.f32 %v636_v6, %v366_v10  ;;  %v371_v14 = vstv %s370_s12  ;;  %s646_s26 = sld [smem:[#allocation2 + $0x7]] }
  0x4d   : > { %v377_v16 = vstv %s1168_s11  ;;  %s1178_s28 = sld [smem:[#allocation7 + $0x2]]  ;;  %v372_v19 = vmul.f32 %v371_v14, %v369_v11  ;;  %s1204_s11 = scalar_lea.vmem [#allocation13], %s669_s10 }
  0x4e   : > { %v362_v18 = vadd.f32 %v361_v9, %v356_v12  ;;  %s1181_s1 = sld [smem:[#allocation7 + $0x3]]  ;;  %v378_v24 = vmul.f32 %v638_v15, %v377_v16  ;;  %v381_v34 = vstv %s1171_s14  ;;  %s898_s10 = scalar_lea.hbm %s1257_s5, 12 }
  0x4f   : > { %v386_v21 = vstv %s640_s29  ;;  %s1184_s2 = sld [smem:[#allocation9 + $0x1]] }
  0x50   : > { %v368_v23 = vadd.f32 %v367_v13, %v362_v18  ;;  %v387_v25 = vmul.f32 %v386_v21, %v384_v17  ;;  %v390_v26 = vstv %s642_s15  ;;  %s652_s27 = sld [smem:[#allocation2 + $0x8]] }
  0x51   : > { %v391_v28 = vmul.f32 %v641_v20, %v390_v26  ;;  %v395_v29 = vstv %s644_s17  ;;  %s1188_s16 = sld [smem:[#allocation2 + $0x9]]  ;;  %s465_s17 = scalar_lea.hbm %s1257_s5, %s670_s3 }
  0x52   : > { %v373_v30 = vadd.f32 %v372_v19, %v368_v23  ;;  %v396_v31 = vmul.f32 %v643_v22, %v395_v29  ;;  %v400_v32 = vstv %s646_s26  ;;  %s656_s24 = sld [smem:[#allocation2 + $0xa]]  ;;  %s466_s26 = sshll.u32 %s1204_s11, 4  ;;  %s467_s26 = int_to_ptr.vmem [resolvable:$true] %s466_s26 }
  0x53   : > { %v392_v35 = vadd.f32 %v391_v28, %v387_v25  ;;  %v401_v36 = vmul.f32 %v645_v27, %v400_v32  ;;  %v405_v37 = vstv %s1178_s28  ;;  %s658_s13 = sld [smem:[#allocation2 + $0xb]]  ;;  %s468_s21 = sshll.u32 %s465_s17, 4  ;;  %s469_s21 = int_to_ptr.hbm [resolvable:$true] %s468_s21 }
  0x54   : > { %v379_v38 = vadd.f32 %v378_v24, %v373_v30  ;;  %v410_v40 = vstv %s1181_s1  ;;  %s1196_s9 = sld [smem:[#allocation7 + $0x4]]  ;;  %v406_v43 = vmul.f32 %v405_v37, %v403_v33  ;;  %s892_s28 = sshra.s32 %s469_s21, 4  ;;  %s893_s28 = int_to_ptr.hbm [resolvable:$true] %s892_s28 }
  0x55   : > { %v397_v42 = vadd.f32 %v396_v31, %v392_v35  ;;  %s661_s12 = sld [smem:[#allocation7 + $0x5]]  ;;  %v411_v49 = vmul.f32 %v648_v39, %v410_v40  ;;  %v414_v59 = vstv %s1184_s2  ;;  %s894_s1 = scalar_lea.hbm %s893_s28, 6 }
  0x56   : > { %v382_v45 = vadd.f32 %v381_v34, %v379_v38  ;;  %v420_v46 = vstv %s652_s27  ;;  %s662_s14 = sld [smem:[#allocation9 + $0x2]]  ;;  %p895_p3 = scmp.ne.s32.totalorder %s893_s28, %s894_s1 }
  0x57   : > { %v402_v48 = vadd.f32 %v401_v36, %v397_v42  ;;  %v421_v50 = vmul.f32 %v420_v46, %v418_v41  ;;  %v424_v51 = vstv %s1188_s16  ;;  %p899_p11 = scmp.lt.s32.totalorder %s893_s28, %s1257_s5  ;;  %p900_p12 = scmp.lt.s32.totalorder %s898_s10, %s894_s1 }
  0x58   : > { %383 = vst [vmem:[%s1204_s11] sm:$0x3] %v382_v45  ;;  %v425_v53 = vmul.f32 %v653_v44, %v424_v51  ;;  %v429_v54 = vstv %s656_s24  ;;  %p896_p5 = pnand %p895_p3, %p1067_p8 }
  0x59   : > { %v407_v55 = vadd.f32 %v406_v43, %v402_v48  ;;  %v430_v56 = vmul.f32 %v655_v47, %v429_v54  ;;  %v434_v57 = vstv %s658_s13  ;;  %p901_p0 = por %p900_p12, %p899_p11 }
  0x5a   : > { %v426_v60 = vadd.f32 %v425_v53, %v421_v50  ;;  %v435_v61 = vmul.f32 %v657_v52, %v434_v57  ;;  %v439_v62 = vstv %s1196_s9  ;;  %p897_p7 = pneg %p896_p5 }
  0x5b   : > { %v412_v63 = vadd.f32 %v411_v49, %v407_v55  ;;  %v444_v1 = vstv %s661_s12  ;;  %v440_v3 = vmul.f32 %v439_v62, %v437_v58 }
  0x5c   : > { %v431_v2 = vadd.f32 %v430_v56, %v426_v60  ;;  %v445_v6 = vmul.f32 %v660_v0, %v444_v1  ;;  %v448_v8 = vstv %s662_s14  ;;  %p902_p1 = pnand %p901_p0, %p897_p7 }
  0x5d   : > { %v415_v4 = vadd.f32 %v414_v59, %v412_v63 }
  0x5e   : > { %v436_v5 = vadd.f32 %v435_v61, %v431_v2 }
  0x5f   : > { %651 = vst [vmem:[%s1204_s11 + $0x2] sm:$0x3] %v415_v4 }
  0x60   : > { %v441_v7 = vadd.f32 %v440_v3, %v436_v5 }
  0x62   : > { %v446_v9 = vadd.f32 %v445_v6, %v441_v7 }
  0x64   : > { %v449_v10 = vadd.f32 %v448_v8, %v446_v9 }
  0x66   : > { %663 = vst [vmem:[%s1204_s11 + $0x4] sm:$0x3] %v449_v10 }
  0x67   : > { %905 = shalt.err (!%p902_p1)
}
  0x68   : > { %s983_s0 = smov 32   ;;  %s984_s13 = smov 2  }
  0x69   : > { %687 = dma.vmem_to_hbm [thread:$0]  (%p1067_p8), %s467_s26, 96, %s469_s21, %s453_s8, %s983_s0, %s983_s0, %s984_s13  }
  0x6a PF: > { %s483_s9 = sand.u32 1, %s956_s18   ;;  %p707_p2 = pnand %p619_p13, %p1071_p9 }
  0x6b   : > { %s484_s12 = scalar_lea.sflag [#allocation4], %s483_s9 }
  0x6c   : > { %p708_p4 = pneg %p707_p2 }
  0x6e   : > { %951 = dma.done.wait (%p708_p4), %s484_s12, 96  }
  0x6f   : > { %953 = vsyncadd (%p708_p4), %s484_s12, 4294967200  ;;  %s27_s23 = sadd.s32 1, %s976_s23   ;;  %s1273_s18 = smov %s960_s19 }
  0x70   : > { %p24_p6 = scmp.ge.s32.totalorder %s27_s23, 4   ;;  %s1274_s19 = smov %s964_s20 }
  0x71   : > { %s1275_s20 = smov %s1112_s25  ;;  %s1276_s21 = smov %s972_s22 }
  0x72   : > { %s1277_s22 = smov %s1279_s7  ;;  %26 = sbr.rel (!%p24_p6) target bundleno = 16 (0x10), region = 118 }
  0x77   :  { %490 = vsyncpa [#allocation3], 1 }
  0x78   :  { %492 = vsyncpa [#allocation3 + $0x1], 1 }
  0x79   :  { %493 = vsyncpa [#allocation12], 1 }
  0x7a   :  { %495 = vsyncpa [#allocation12 + $0x1], 1 }
  0x7b   :  { %496 = vsyncpa [#allocation4], 1 }
  0x7c   :  { %498 = vsyncpa [#allocation4 + $0x1], 1 }
  0x7d   :  { %499 = vsyncpa [#allocation5], 1 }
  0x7e   :  { %501 = vsyncpa [#allocation5 + $0x1], 1 }
  0x7f   :  { %502 = vsyncpa [#allocation8], 1 }
  0x80   :  { %503 = vsyncpa [#allocation6], 1 }
  0x81   :  { %505 = vsyncpa [#allocation6 + $0x1], 1 }

</bundles_post_ra>
